<compile_context>
chip_gen: v7x
topology: tpu7x:2x2x1
jax: 0.10.0
libtpu: 0.0.40
codegen_flags: <defaults>
</compile_context>

<pallas_src>
import functools
import math

import jax
import jax.numpy as jnp
from jax.experimental import pallas as pl
from jax.experimental.pallas import tpu as pltpu


# ----------------------------------------------------------------------------
# relative position table (plain JAX glue, matches get_relative_positions)
# ----------------------------------------------------------------------------
def get_relative_positions(window_size):
    coords_h = jnp.arange(window_size)
    coords_w = jnp.arange(window_size)
    ch, cw = jnp.meshgrid(coords_h, coords_w, indexing="ij")
    coords = jnp.stack([ch, cw])                                   # (2, W, W)
    coords_flatten = coords.reshape(2, -1)                         # (2, N)
    rel = coords_flatten[:, :, None] - coords_flatten[:, None, :]  # (2, N, N)
    rel = jnp.transpose(rel, (1, 2, 0)).astype(jnp.float32)        # (N, N, 2)
    return jnp.sign(rel) * jnp.log1p(jnp.abs(rel))


# ----------------------------------------------------------------------------
# Pallas kernel 1 (run ONCE at construction, result cached):
#   meta MLP  Linear(2,256) -> ReLU -> Linear(256,H)  on (N*N, 2) coords
# ----------------------------------------------------------------------------
def _meta_mlp_kernel(rel_ref, w1_ref, b1_ref, w2_ref, b2_ref, o_ref):
    rel = rel_ref[...]                                             # (N*N, 2)
    # K=2 contraction on the VPU (outer-product form) instead of an MXU pass
    # whose contraction dim would be padded to 128/256 (>98% wasted).
    h = (rel[:, 0:1] * w1_ref[0:1, :]
         + rel[:, 1:2] * w1_ref[1:2, :]
         + b1_ref[...])                                            # (N*N, 256)
    h = jnp.maximum(h, 0.0)                                        # ReLU
    o_ref[...] = (jnp.dot(h, w2_ref[...], preferred_element_type=jnp.float32)
                  + b2_ref[...])                                   # (N*N, H)


def meta_mlp_bias(rel_flat, w1, b1, w2, b2):
    nn_, _ = rel_flat.shape
    hidden = w1.shape[1]
    heads = w2.shape[1]
    full = lambda shape: pl.BlockSpec(shape, lambda i: (0,) * len(shape))
    return pl.pallas_call(
        _meta_mlp_kernel,
        out_shape=jax.ShapeDtypeStruct((nn_, heads), jnp.float32),
        grid=(1,),
        in_specs=[
            full((nn_, 2)),
            full((2, hidden)),
            full((1, hidden)),
            full((hidden, heads)),
            full((1, heads)),
        ],
        out_specs=full((nn_, heads)),
        compiler_params=pltpu.CompilerParams(dimension_semantics=("arbitrary",)),
    )(rel_flat, w1, b1.reshape(1, -1), w2, b2.reshape(1, -1))


# ----------------------------------------------------------------------------
# Pallas kernel 2: fused window attention for one batch element (all heads).
#   reads qkv in (N, 3*dim) layout, writes fused (N, H*d) output.
# ----------------------------------------------------------------------------
def _window_attn_kernel(qkv_ref, bias_ref, o_ref, *, num_heads, head_dim, scale):
    x = qkv_ref[0]                                                 # (N, 3*dim)
    dim = num_heads * head_dim
    outs = []
    for h in range(num_heads):                                     # static unroll (H small)
        lo = h * head_dim
        qh = x[:, lo:lo + head_dim] * scale                        # (N, d)
        kh = x[:, dim + lo:dim + lo + head_dim]                    # (N, d)
        vh = x[:, 2 * dim + lo:2 * dim + lo + head_dim]            # (N, d)
        # QK^T as a dot_general contracting the LAST dims of both operands
        # (no materialized k.T / XLU transpose before the MXU push).
        s = jax.lax.dot_general(
            qh, kh, (((1,), (1,)), ((), ())),
            preferred_element_type=jnp.float32)                    # (N, N)
        s = s + bias_ref[h]                                        # + rel-pos bias
        s = s - jnp.max(s, axis=-1, keepdims=True)                 # stable softmax
        p = jnp.exp(s)                                             # EUP
        denom = jnp.sum(p, axis=-1, keepdims=True)                 # XLU reduce
        inv = pl.reciprocal(denom, approx=True)                    # EUP slot
        inv = inv * (2.0 - denom * inv)                            # one Newton step
        p = p * inv
        outs.append(jnp.dot(p, vh, preferred_element_type=jnp.float32))  # (N, d)
    # Fused (N, H*d) layout: single lane-contiguous store, matches the module's
    # output layout, so no XLA transpose kernel after the pallas_call.
    o_ref[0] = jnp.concatenate(outs, axis=-1)


def window_attention_core(qkv, bias, num_heads, head_dim, scale):
    B, N, three_dim = qkv.shape
    dim = num_heads * head_dim
    H = num_heads
    kernel = functools.partial(
        _window_attn_kernel, num_heads=H, head_dim=head_dim, scale=scale)
    return pl.pallas_call(
        kernel,
        out_shape=jax.ShapeDtypeStruct((B, N, dim), jnp.float32),
        grid=(B,),
        in_specs=[
            pl.BlockSpec((1, N, three_dim), lambda b: (b, 0, 0)),  # native qkv layout
            pl.BlockSpec((H, N, N), lambda b: (0, 0, 0)),          # bias: constant block (fetched once)
        ],
        out_specs=pl.BlockSpec((1, N, dim), lambda b: (b, 0, 0)),
        compiler_params=pltpu.CompilerParams(
            dimension_semantics=("parallel",)),                    # >=2 steps -> both TCs on v7x
    )(qkv, bias)


# ----------------------------------------------------------------------------
# Full module forward
# ----------------------------------------------------------------------------
class WindowAttentionPallas:
    def __init__(self, dim, window_size, num_heads, key):
        self.dim = dim
        self.window_size = window_size
        self.num_heads = num_heads
        self.head_dim = dim // num_heads
        self.scale = self.head_dim ** (-0.5)
        self.relative_positions = get_relative_positions(window_size)  # (N, N, 2)

        # Deterministic parameter init (shapes from nn.Linear(2,256), nn.Linear(256,H)).
        k1, k2, k3, k4 = jax.random.split(key, 4)
        self.w1 = jax.random.normal(k1, (2, 256), jnp.float32) * (1.0 / math.sqrt(2.0))
        self.b1 = jax.random.normal(k2, (256,), jnp.float32) * 0.01
        self.w2 = jax.random.normal(k3, (256, num_heads), jnp.float32) * (1.0 / math.sqrt(256.0))
        self.b2 = jax.random.normal(k4, (num_heads,), jnp.float32) * 0.01

        # The relative-position bias depends only on window_size and the meta-MLP
        # parameters (NOT on qkv), so hoist it out of the per-forward path:
        # compute once (Pallas kernel) and cache as (H, N, N).
        N = window_size * window_size
        rel_flat = self.relative_positions.reshape(N * N, 2)
        mlp_out = meta_mlp_bias(rel_flat, self.w1, self.b1, self.w2, self.b2)  # (N*N, H)
        self.bias = jnp.transpose(mlp_out.reshape(N, N, num_heads), (2, 0, 1))  # (H, N, N)

    def __call__(self, qkv):
        # Single fused pallas_call; output already in (B, N, dim) layout.
        return window_attention_core(
            qkv, self.bias, self.num_heads, self.head_dim, self.scale)


# ----------------------------------------------------------------------------
# Pure-JAX reference for verification
# ----------------------------------------------------------------------------
def reference_forward(mod, qkv):
    B, N, _ = qkv.shape
    H, d = mod.num_heads, mod.head_dim
    qkv_r = qkv.reshape(B, N, 3, H, d).transpose(2, 0, 3, 1, 4)
    q, k, v = qkv_r[0] * mod.scale, qkv_r[1], qkv_r[2]
    attn = jnp.einsum("bhqd,bhkd->bhqk", q, k)
    rel = mod.relative_positions.reshape(N * N, 2)
    bias = jnp.maximum(rel @ mod.w1 + mod.b1, 0.0) @ mod.w2 + mod.b2
    bias = bias.reshape(N, N, H).transpose(2, 0, 1)
    attn = attn + bias[None]
    attn = jax.nn.softmax(attn, axis=-1)
    x = jnp.einsum("bhqk,bhkd->bhqd", attn, v)
    return x.transpose(0, 2, 1, 3).reshape(B, N, mod.dim)


if __name__ == "__main__":
    dim, window_size, num_heads = 32, 4, 4
    N = window_size * window_size                 # 16 tokens per window
    B = 2

    key = jax.random.PRNGKey(0)
    k_in, k_params = jax.random.split(key)
    qkv = jax.random.normal(k_in, (B, N, 3 * dim), jnp.float32)

    mod = WindowAttentionPallas(dim, window_size, num_heads, k_params)

    out = mod(qkv)
    out = jax.block_until_ready(out)

    ref = reference_forward(mod, qkv)
    assert out.shape == (B, N, dim)
    assert jnp.allclose(out, ref, atol=2e-4, rtol=2e-4)

    print("KERNEL_OK")
</pallas_src>

<mosaic_0001>
module attributes {stable_mosaic.version = 11 : i64} {
  func.func @_meta_mlp_kernel(%arg0: i32, %arg1: memref<256x2xf32, #tpu.memory_space<vmem>>, %arg2: memref<2x256xf32, #tpu.memory_space<vmem>>, %arg3: memref<1x256xf32, #tpu.memory_space<vmem>>, %arg4: memref<256x4xf32, #tpu.memory_space<vmem>>, %arg5: memref<1x4xf32, #tpu.memory_space<vmem>>, %arg6: memref<256x4xf32, #tpu.memory_space<vmem>>) attributes {dimension_semantics = [#tpu.dimension_semantics<arbitrary>], iteration_bounds = array<i64: 1>, scalar_prefetch = 0 : i64, scratch_operands = 0 : i64, tpu.core_type = #tpu.core_type<tc>, window_params = [{pipeline_mode = #tpu.pipeline_mode<synchronous>, transform_indices = @transform_0, window_bounds = array<i64: 256, 2>}, {pipeline_mode = #tpu.pipeline_mode<synchronous>, transform_indices = @transform_1, window_bounds = array<i64: 2, 256>}, {pipeline_mode = #tpu.pipeline_mode<synchronous>, transform_indices = @transform_2, window_bounds = array<i64: 1, 256>}, {pipeline_mode = #tpu.pipeline_mode<synchronous>, transform_indices = @transform_3, window_bounds = array<i64: 256, 4>}, {pipeline_mode = #tpu.pipeline_mode<synchronous>, transform_indices = @transform_4, window_bounds = array<i64: 1, 4>}, {pipeline_mode = #tpu.pipeline_mode<synchronous>, transform_indices = @transform_5, window_bounds = array<i64: 256, 4>}]} {
    %c0 = arith.constant 0 : index
    %c0_0 = arith.constant 0 : index
    %0 = vector.load %arg1[%c0, %c0_0] : memref<256x2xf32, #tpu.memory_space<vmem>>, vector<256x2xf32>
    %1 = vector.extract_strided_slice %0 {offsets = [0, 0], sizes = [256, 1], strides = [1, 1]} : vector<256x2xf32> to vector<256x1xf32>
    %c0_1 = arith.constant 0 : index
    %c0_2 = arith.constant 0 : index
    %2 = vector.load %arg2[%c0_1, %c0_2] : memref<2x256xf32, #tpu.memory_space<vmem>>, vector<1x256xf32>
    %3 = vector.broadcast %1 : vector<256x1xf32> to vector<256x256xf32>
    %4 = vector.broadcast %2 : vector<1x256xf32> to vector<256x256xf32>
    %5 = arith.mulf %3, %4 : vector<256x256xf32>
    %6 = vector.extract_strided_slice %0 {offsets = [0, 1], sizes = [256, 1], strides = [1, 1]} : vector<256x2xf32> to vector<256x1xf32>
    %c1 = arith.constant 1 : index
    %c0_3 = arith.constant 0 : index
    %7 = vector.load %arg2[%c1, %c0_3] : memref<2x256xf32, #tpu.memory_space<vmem>>, vector<1x256xf32>
    %8 = vector.broadcast %6 : vector<256x1xf32> to vector<256x256xf32>
    %9 = vector.broadcast %7 : vector<1x256xf32> to vector<256x256xf32>
    %10 = arith.mulf %8, %9 : vector<256x256xf32>
    %11 = arith.addf %5, %10 : vector<256x256xf32>
    %c0_4 = arith.constant 0 : index
    %c0_5 = arith.constant 0 : index
    %12 = vector.load %arg3[%c0_4, %c0_5] : memref<1x256xf32, #tpu.memory_space<vmem>>, vector<1x256xf32>
    %13 = vector.broadcast %12 : vector<1x256xf32> to vector<256x256xf32>
    %14 = arith.addf %11, %13 : vector<256x256xf32>
    %cst = arith.constant 0.000000e+00 : f32
    %15 = vector.broadcast %cst : f32 to vector<256x256xf32>
    %16 = arith.maximumf %14, %15 : vector<256x256xf32>
    %c0_6 = arith.constant 0 : index
    %c0_7 = arith.constant 0 : index
    %17 = vector.load %arg4[%c0_6, %c0_7] : memref<256x4xf32, #tpu.memory_space<vmem>>, vector<256x4xf32>
    %cst_8 = arith.constant dense<0.000000e+00> : vector<256x4xf32>
    %18 = tpu.matmul %16, %17, %cst_8 {dimension_numbers = #tpu.dot_dimension_numbers<[1], [0], [0], [1], [0, 0, 1, 1], [], []>} : vector<256x256xf32>, vector<256x4xf32>, vector<256x4xf32> -> vector<256x4xf32>
    %c0_9 = arith.constant 0 : index
    %c0_10 = arith.constant 0 : index
    %19 = vector.load %arg5[%c0_9, %c0_10] : memref<1x4xf32, #tpu.memory_space<vmem>>, vector<1x4xf32>
    %20 = vector.broadcast %19 : vector<1x4xf32> to vector<256x4xf32>
    %21 = arith.addf %18, %20 : vector<256x4xf32>
    %c0_11 = arith.constant 0 : index
    %c0_12 = arith.constant 0 : index
    %22 = vector.load %arg6[%c0_11, %c0_12] : memref<256x4xf32, #tpu.memory_space<vmem>>, vector<256x4xf32>
    tpu.vector_store %arg6[%c0_11, %c0_12], %21 {strides = array<i32>} : memref<256x4xf32, #tpu.memory_space<vmem>>, vector<256x4xf32>,
    return
  }
  func.func @transform_0(%arg0: i32) -> (i32, i32) {
    %c0_i32 = arith.constant 0 : i32
    %c0_i32_0 = arith.constant 0 : i32
    %c0_i32_1 = arith.constant 0 : i32
    return %c0_i32, %c0_i32_0 : i32, i32
  }
  func.func @transform_1(%arg0: i32) -> (i32, i32) {
    %c0_i32 = arith.constant 0 : i32
    %c0_i32_0 = arith.constant 0 : i32
    %c0_i32_1 = arith.constant 0 : i32
    return %c0_i32, %c0_i32_0 : i32, i32
  }
  func.func @transform_2(%arg0: i32) -> (i32, i32) {
    %c0_i32 = arith.constant 0 : i32
    %c0_i32_0 = arith.constant 0 : i32
    %c0_i32_1 = arith.constant 0 : i32
    return %c0_i32, %c0_i32_0 : i32, i32
  }
  func.func @transform_3(%arg0: i32) -> (i32, i32) {
    %c0_i32 = arith.constant 0 : i32
    %c0_i32_0 = arith.constant 0 : i32
    %c0_i32_1 = arith.constant 0 : i32
    return %c0_i32, %c0_i32_0 : i32, i32
  }
  func.func @transform_4(%arg0: i32) -> (i32, i32) {
    %c0_i32 = arith.constant 0 : i32
    %c0_i32_0 = arith.constant 0 : i32
    %c0_i32_1 = arith.constant 0 : i32
    return %c0_i32, %c0_i32_0 : i32, i32
  }
  func.func @transform_5(%arg0: i32) -> (i32, i32) {
    %c0_i32 = arith.constant 0 : i32
    %c0_i32_0 = arith.constant 0 : i32
    %c0_i32_1 = arith.constant 0 : i32
    return %c0_i32, %c0_i32_0 : i32, i32
  }
}

</mosaic_0001>

<bundles_post_ra>
// kernel: tpu_custom_call.1
= control target key start
LH: loop header
LB: loop body
LE: loop exit
PB: predicated region body
PF: predicated region fallthrough
CT: control target
= control target key end

     0   :  { %v1117_v0 = vmov 1   ;;  %v1118_v5 = vmov 0.0|0.0   ;;  %v1119_v10 = vmov 0   ;;  %vm961_vm0 = vcmask 31744   ;;  %s1850_s0 = inlined_call_operand.vmem [shape: f32[256,2], index: 0, kind: input, shape index: {}]   ;;  %s1851_s3 = inlined_call_operand.vmem [shape: f32[256,4], index: 3, kind: input, shape index: {}]   ;;  %s1852_s1 = inlined_call_operand.vmem [shape: f32[2,256], index: 1, kind: input, shape index: {}]   ;;  %s1853_s2 = inlined_call_operand.vmem [shape: f32[1,256], index: 2, kind: input, shape index: {}]   ;;  %s1854_s4 = inlined_call_operand.vmem [shape: f32[1,4], index: 4, kind: input, shape index: {}]   ;;  %s1855_s5 = inlined_call_operand.vmem [shape: f32[256,4], index: 5, kind: output, shape index: {}]  }
   0x1   :  { %1085 = vset.pattern.permute.xlu0 %v1117_v0  ;;  %1083 = vset.pattern.permute.xlu1 %v1117_v0  ;;  %v1155_v1 = vld [vmem:[%s1850_s0 + $0x8] sm:$0xff]  ;;  %v1160_v2 = vld [vmem:[%s1850_s0] sm:$0xff]  ;;  %v1167_v3 = vld [vmem:[%s1850_s0 + $0x18] sm:$0xff] }
   0x2   :  { %295 = vperm.xlu0 %1085, %v1155_v1   ;;  %291 = vperm.xlu1 %1083, %v1160_v2   ;;  %v1172_v4 = vld [vmem:[%s1850_s0 + $0x80] sm:$0xff]  ;;  %v1181_v6 = vld [vmem:[%s1850_s0 + $0x28] sm:$0xff]  ;;  %v699_v12 = vld [vmem:[%s1851_s3 + $0x10] sm:$0xff] }
   0x3   :  { %1000 = vmatprep.subr.bf16.mxu0 %v1118_v5  ;;  %1048 = vmatprep.subr.bf16.mxu1 %v1118_v5  ;;  %v37_v7 = vld [vmem:[%s1850_s0 + $0x88] sm:$0xff]  ;;  %v697_v8 = vld [vmem:[%s1851_s3] sm:$0xff]  ;;  %v700_v13 = vld [vmem:[%s1851_s3 + $0x18] sm:$0xff] }
   0x4   :  { %v698_v9 = vld [vmem:[%s1851_s3 + $0x8] sm:$0xff]  ;;  %v1203_v14 = vld [vmem:[%s1850_s0 + $0x38] sm:$0xff]  ;;  %v1004_v15 = vpack.c.bf16 %v700_v13, %v699_v12  ;;  %v701_v16 = vld [vmem:[%s1851_s3 + $0x20] sm:$0xff] }
   0x5   :  { %v1001_v11 = vpack.c.bf16 %v698_v9, %v697_v8  ;;  %v702_v17 = vld [vmem:[%s1851_s3 + $0x28] sm:$0xff]  ;;  %v703_v20 = vld [vmem:[%s1851_s3 + $0x30] sm:$0xff]  ;;  %v704_v21 = vld [vmem:[%s1851_s3 + $0x38] sm:$0xff] }
   0x6   :  { %303 = vperm.xlu0 %1085, %v1167_v3   ;;  %355 = vperm.xlu1 %1083, %v1172_v4   ;;  %v1218_v18 = vld [vmem:[%s1850_s0 + $0x48] sm:$0xff]  ;;  %v1007_v19 = vpack.c.bf16 %v702_v17, %v701_v16  ;;  %v22_v22 = vld [vmem:[%s1850_s0 + $0x10] sm:$0xff]  ;;  %v1235_v23 = vld [vmem:[%s1850_s0 + $0x58] sm:$0xff]  ;;  %v1010_v24 = vpack.c.bf16 %v704_v21, %v703_v20 }
   0x7   :  { %1002 = vmatpush1.bf16.msra.mxu0 %v1001_v11  ;;  %1064 = vmatpush1.bf16.msra.mxu1 %v1001_v11  ;;  %v705_v25 = vld [vmem:[%s1851_s3 + $0x40] sm:$0xff]  ;;  %v706_v26 = vld [vmem:[%s1851_s3 + $0x48] sm:$0xff]  ;;  %v707_v29 = vld [vmem:[%s1851_s3 + $0x50] sm:$0xff] }
   0x8   :  { %1003 = vmatprep.subr.bf16.mxu0 %v1118_v5  ;;  %1049 = vmatprep.subr.bf16.mxu1 %v1118_v5  ;;  %v1249_v27 = vld [vmem:[%s1850_s0 + $0x68] sm:$0xff]  ;;  %v1013_v28 = vpack.c.bf16 %v706_v26, %v705_v25  ;;  %v708_v30 = vld [vmem:[%s1851_s3 + $0x58] sm:$0xff]  ;;  %v38_v31 = vld [vmem:[%s1850_s0 + $0x90] sm:$0xff] }
   0x9   :  { %v1016_v32 = vpack.c.bf16 %v708_v30, %v707_v29  ;;  %v709_v33 = vld [vmem:[%s1851_s3 + $0x60] sm:$0xff]  ;;  %v710_v34 = vld [vmem:[%s1851_s3 + $0x68] sm:$0xff]  ;;  %v39_v35 = vld [vmem:[%s1850_s0 + $0x98] sm:$0xff] }
   0xa   :  { %311 = vperm.xlu0 %1085, %v1181_v6   ;;  %1084 = vset.pattern.permute.xlu1 %v1119_v10  ;;  %v1019_v36 = vpack.c.bf16 %v710_v34, %v709_v33  ;;  %v711_v37 = vld [vmem:[%s1851_s3 + $0x70] sm:$0xff]  ;;  %v712_v38 = vld [vmem:[%s1851_s3 + $0x78] sm:$0xff]  ;;  %v713_v40 = vld [vmem:[%s1851_s3 + $0x80] sm:$0xff] }
   0xb   :  { %140 = vperm.xlu1 %1084, %v37_v7   ;;  %1005 = vmatpush1.bf16.msra.mxu0 %v1004_v15  ;;  %v1022_v39 = vpack.c.bf16 %v712_v38, %v711_v37  ;;  %v714_v41 = vld [vmem:[%s1851_s3 + $0x88] sm:$0xff]  ;;  %v24_v43 = vld [vmem:[%s1850_s0 + $0x20] sm:$0xff]  ;;  %v715_v44 = vld [vmem:[%s1851_s3 + $0x90] sm:$0xff] }
   0xc   :  { %1006 = vmatprep.subr.bf16.mxu0 %v1118_v5  ;;  %1065 = vmatpush1.bf16.msra.mxu1 %v1004_v15  ;;  %v1025_v42 = vpack.c.bf16 %v714_v41, %v713_v40  ;;  %v716_v45 = vld [vmem:[%s1851_s3 + $0x98] sm:$0xff]  ;;  %v717_v47 = vld [vmem:[%s1851_s3 + $0xa0] sm:$0xff]  ;;  %v718_v48 = vld [vmem:[%s1851_s3 + $0xa8] sm:$0xff] }
   0xd   :  { %1050 = vmatprep.subr.bf16.mxu1 %v1118_v5  ;;  %v1028_v46 = vpack.c.bf16 %v716_v45, %v715_v44  ;;  %v40_v49 = vld [vmem:[%s1850_s0 + $0xa0] sm:$0xff]  ;;  %v1031_v50 = vpack.c.bf16 %v718_v48, %v717_v47  ;;  %v719_v51 = vld [vmem:[%s1851_s3 + $0xb0] sm:$0xff]  ;;  %v720_v52 = vld [vmem:[%s1851_s3 + $0xb8] sm:$0xff] }
   0xe   :  { %319 = vperm.xlu0 %1085, %v1203_v14   ;;  %v1034_v53 = vpack.c.bf16 %v720_v52, %v719_v51  ;;  %v721_v54 = vld [vmem:[%s1851_s3 + $0xc0] sm:$0xff]  ;;  %v722_v55 = vld [vmem:[%s1851_s3 + $0xc8] sm:$0xff]  ;;  %v42_v56 = vld [vmem:[%s1850_s0 + $0xb0] sm:$0xff] }
   0xf   :  { %1086 = vset.pattern.permute.xlu1 %v1117_v0  ;;  %1008 = vmatpush1.bf16.msra.mxu0 %v1007_v19  ;;  %v41_v57 = vld [vmem:[%s1850_s0 + $0xa8] sm:$0xff]  ;;  %v1037_v58 = vpack.c.bf16 %v722_v55, %v721_v54  ;;  %v723_v59 = vld [vmem:[%s1851_s3 + $0xd0] sm:$0xff]  ;;  %v724_v60 = vld [vmem:[%s1851_s3 + $0xd8] sm:$0xff] }
  0x10   :  { %359 = vperm.xlu1 %1086, %v37_v7   ;;  %1009 = vmatprep.subr.bf16.mxu0 %v1118_v5  ;;  %v1040_v61 = vpack.c.bf16 %v724_v60, %v723_v59  ;;  %v725_v62 = vld [vmem:[%s1851_s3 + $0xe0] sm:$0xff]  ;;  %v726_v63 = vld [vmem:[%s1851_s3 + $0xe8] sm:$0xff]  ;;  %v46_v8 = vld [vmem:[%s1850_s0 + $0xd0] sm:$0xff] }
  0x11   :  { %1066 = vmatpush1.bf16.msra.mxu1 %v1007_v19  ;;  %v48_v9 = vld [vmem:[%s1850_s0 + $0xe0] sm:$0xff]  ;;  %v43_v11 = vld [vmem:[%s1850_s0 + $0xb8] sm:$0xff]  ;;  %v30_v15 = vld [vmem:[%s1850_s0 + $0x50] sm:$0xff] }
  0x12   :  { %327 = vperm.xlu0 %1085, %v1218_v18   ;;  %1051 = vmatprep.subr.bf16.mxu1 %v1118_v5  ;;  %v28_v12 = vld [vmem:[%s1850_s0 + $0x40] sm:$0xff]  ;;  %v35_v13 = vld [vmem:[%s1850_s0 + $0x78] sm:$0xff]  ;;  %v49_v37 = vld [vmem:[%s1850_s0 + $0xe8] sm:$0xff] }
  0x13   :  { %1011 = vmatpush1.bf16.msra.mxu0 %v1010_v24  ;;  %v47_v16 = vld [vmem:[%s1850_s0 + $0xd8] sm:$0xff] }
  0x14   :  { %1087 = vset.pattern.permute.xlu1 %v1119_v10  ;;  %1012 = vmatprep.subr.bf16.mxu0 %v1118_v5 }
  0x15   :  { %65 = vperm.xlu1 %1087, %v22_v22   ;;  %1067 = vmatpush1.bf16.msra.mxu1 %v1010_v24  ;;  %v214_v24 = vlaneseq }
  0x16   :  { %335 = vperm.xlu0 %1085, %v1235_v23   ;;  %1052 = vmatprep.subr.bf16.mxu1 %v1118_v5 }
  0x17   :  { %1014 = vmatpush1.bf16.msra.mxu0 %v1013_v28 }
  0x18   :  { %1015 = vmatprep.subr.bf16.mxu0 %v1118_v5 }
  0x19   :  { %1088 = vset.pattern.permute.xlu1 %v1117_v0  ;;  %1068 = vmatpush1.bf16.msra.mxu1 %v1013_v28 }
  0x1a   :  { %343 = vperm.xlu0 %1085, %v1249_v27   ;;  %299 = vperm.xlu1 %1088, %v22_v22  }
  0x1b   :  { %1017 = vmatpush1.bf16.msra.mxu0 %v1016_v32  ;;  %1053 = vmatprep.subr.bf16.mxu1 %v1118_v5 }
  0x1c   :  { %1018 = vmatprep.subr.bf16.mxu0 %v1118_v5 }
  0x1d   :  { %1069 = vmatpush1.bf16.msra.mxu1 %v1016_v32  ;;  %v52_v32 = vld [vmem:[%s1852_s1] ss:$2 sm:$0x3] }
  0x1e   :  { %1110 = vset.pattern.permute.xlu0 %v1119_v10  ;;  %363 = vperm.xlu1 %1088, %v38_v31  }
  0x1f   :  { %55 = vperm.xlu0 %1110, %v1160_v2   ;;  %1020 = vmatpush1.bf16.msra.mxu0 %v1019_v36  ;;  %v1043_v2 = vpack.c.bf16 %v726_v63, %v725_v62 }
  0x20   :  { %1054 = vmatprep.subr.bf16.mxu1 %v1118_v5  ;;  %1021 = vmatprep.subr.bf16.mxu0 %v1118_v5 }
  0x21   :  { %1070 = vmatpush1.bf16.msra.mxu1 %v1019_v36 }
  0x22   :  { %1089 = vset.pattern.permute.xlu1 %v1119_v10  ;;  %1055 = vmatprep.subr.bf16.mxu1 %v1118_v5 }
  0x23   :  { %135 = vperm.xlu0 %1110, %v1172_v4   ;;  %150 = vperm.xlu1 %1089, %v39_v35   ;;  %v727_v4 = vld [vmem:[%s1851_s3 + $0xf0] sm:$0xff] }
  0x24   :  { %1023 = vmatpush1.bf16.msra.mxu0 %v1022_v39 }
  0x25   :  { %1024 = vmatprep.subr.bf16.mxu0 %v1118_v5  ;;  %1071 = vmatpush1.bf16.msra.mxu1 %v1022_v39 }
  0x26   :  { %1056 = vmatprep.subr.bf16.mxu1 %v1118_v5 }
  0x27   :  { %60 = vperm.xlu0 %1110, %v1155_v1   ;;  %1090 = vset.pattern.permute.xlu1 %v1117_v0  ;;  %v44_v1 = vld [vmem:[%s1850_s0 + $0xc0] sm:$0xff] }
  0x28   :  { %367 = vperm.xlu1 %1090, %v39_v35   ;;  %1026 = vmatpush1.bf16.msra.mxu0 %v1025_v42 }
  0x29   :  { %1027 = vmatprep.subr.bf16.mxu0 %v1118_v5  ;;  %1072 = vmatpush1.bf16.msra.mxu1 %v1025_v42 }
  0x2a   :  { %1057 = vmatprep.subr.bf16.mxu1 %v1118_v5 }
  0x2b   :  { %145 = vperm.xlu0 %1110, %v38_v31   ;;  %v998_v31 = vld [vmem:[%s1852_s1 + $0x1] ss:$2 sm:$0x3] }
  0x2c   :  { %1091 = vset.pattern.permute.xlu1 %v1119_v10  ;;  %1029 = vmatpush1.bf16.msra.mxu0 %v1028_v46 }
  0x2d   :  { %75 = vperm.xlu1 %1091, %v24_v43   ;;  %1030 = vmatprep.subr.bf16.mxu0 %v1118_v5 }
  0x2e   :  { %1073 = vmatpush1.bf16.msra.mxu1 %v1028_v46 }
  0x2f   :  { %70 = vperm.xlu0 %1110, %v1167_v3   ;;  %1058 = vmatprep.subr.bf16.mxu1 %v1118_v5  ;;  %v26_v3 = vld [vmem:[%s1850_s0 + $0x30] sm:$0xff] }
  0x30   :  { %1032 = vmatpush1.bf16.msra.mxu0 %v1031_v50 }
  0x31   :  { %1092 = vset.pattern.permute.xlu1 %v1117_v0  ;;  %1033 = vmatprep.subr.bf16.mxu0 %v1118_v5 }
  0x32   :  { %307 = vperm.xlu1 %1092, %v24_v43   ;;  %1074 = vmatpush1.bf16.msra.mxu1 %v1031_v50  ;;  %v557_v43 = vld [vmem:[%s1853_s2] sm:$0x3] }
  0x33   :  { %155 = vperm.xlu0 %1110, %v40_v49   ;;  %1059 = vmatprep.subr.bf16.mxu1 %v1118_v5 }
  0x34   :  { %1035 = vmatpush1.bf16.msra.mxu0 %v1034_v53 }
  0x35   :  { %1036 = vmatprep.subr.bf16.mxu0 %v1118_v5 }
  0x36   :  { %371 = vperm.xlu1 %1092, %v40_v49   ;;  %1075 = vmatpush1.bf16.msra.mxu1 %v1034_v53 }
  0x37   :  { %80 = vperm.xlu0 %1110, %v1181_v6   ;;  %1060 = vmatprep.subr.bf16.mxu1 %v1118_v5  ;;  %v728_v6 = vld [vmem:[%s1851_s3 + $0xf8] sm:$0xff] }
  0x38   :  { %1038 = vmatpush1.bf16.msra.mxu0 %v1037_v58  ;;  %v1046_v7 = vpack.c.bf16 %v728_v6, %v727_v4 }
  0x39   :  { %1039 = vmatprep.subr.bf16.mxu0 %v1118_v5 }
  0x3a   :  { %1093 = vset.pattern.permute.xlu1 %v1119_v10  ;;  %1076 = vmatpush1.bf16.msra.mxu1 %v1037_v58 }
  0x3b   :  { %165 = vperm.xlu0 %1110, %v42_v56   ;;  %160 = vperm.xlu1 %1093, %v41_v57  }
  0x3c   :  { %1041 = vmatpush1.bf16.msra.mxu0 %v1040_v61  ;;  %1061 = vmatprep.subr.bf16.mxu1 %v1118_v5 }
  0x3d   :  { %1042 = vmatprep.subr.bf16.mxu0 %v1118_v5 }
  0x3e   :  { %1077 = vmatpush1.bf16.msra.mxu1 %v1040_v61 }
  0x3f   :  { %90 = vperm.xlu0 %1110, %v1203_v14   ;;  %1094 = vset.pattern.permute.xlu1 %v1117_v0  ;;  %v45_v14 = vld [vmem:[%s1850_s0 + $0xc8] sm:$0xff] }
  0x40   :  { %375 = vperm.xlu1 %1094, %v41_v57   ;;  %1044 = vmatpush1.bf16.msra.mxu0 %v1043_v2 }
  0x41   :  { %1062 = vmatprep.subr.bf16.mxu1 %v1118_v5  ;;  %1045 = vmatprep.subr.bf16.mxu0 %v1118_v5 }
  0x42   :  { %1078 = vmatpush1.bf16.msra.mxu1 %v1043_v2 }
  0x43   :  { %175 = vperm.xlu0 %1110, %v44_v1   ;;  %1063 = vmatprep.subr.bf16.mxu1 %v1118_v5  ;;  %v1400_v5 = vld [vmem:[%s1850_s0 + $0xf0] sm:$0xff] }
  0x44   :  { %1095 = vset.pattern.permute.xlu1 %v1119_v10  ;;  %1047 = vmatpush1.bf16.msra.mxu0 %v1046_v7 }
  0x45   :  { %85 = vperm.xlu1 %1095, %v26_v3  }
  0x46   :  { %1079 = vmatpush1.bf16.msra.mxu1 %v1046_v7 }
  0x47   :  { %100 = vperm.xlu0 %1110, %v1218_v18  }
  0x49   :  { %1096 = vset.pattern.permute.xlu1 %v1117_v0 }
  0x4a   :  { %315 = vperm.xlu1 %1096, %v26_v3  }
  0x4b   :  { %185 = vperm.xlu0 %1110, %v46_v8  }
  0x4e   :  { %379 = vperm.xlu1 %1096, %v42_v56  }
  0x4f   :  { %110 = vperm.xlu0 %1110, %v1235_v23   ;;  %v32_v23 = vld [vmem:[%s1850_s0 + $0x60] sm:$0xff] }
  0x52   :  { %1097 = vset.pattern.permute.xlu1 %v1119_v10 }
  0x53   :  { %195 = vperm.xlu0 %1110, %v48_v9   ;;  %170 = vperm.xlu1 %1097, %v43_v11  }
  0x57   :  { %120 = vperm.xlu0 %1110, %v1249_v27   ;;  %1098 = vset.pattern.permute.xlu1 %v1117_v0  ;;  %v215_v27 = vshrl.u32 %v214_v24, 7 }
  0x58   :  { %383 = vperm.xlu1 %1098, %v43_v11  }
  0x59   :  { %v220_v29 = vsub.s32 1, %v215_v27  ;;  %v216_v34 = vsub.s32 0, %v215_v27 }
  0x5b   :  { %205 = vperm.xlu0 %1110, %v1400_v5   ;;  %v1448_v35 = vrot.slane %v998_v31, %v220_v29  ;;  %v1450_v36 = vrot.slane %v52_v32, %v220_v29  ;;  %v1457_v40 = vrot.slane %v998_v31, %v216_v34  ;;  %v1461_v42 = vrot.slane %v52_v32, %v216_v34 }
  0x5c   :  { %1099 = vset.pattern.permute.xlu1 %v1119_v10  ;;  %v1469_v50 = vrot.slane %v557_v43, %v220_v29  ;;  %v1476_v58 = vrot.slane %v557_v43, %v216_v34 }
  0x5d   :  { %95 = vperm.xlu1 %1099, %v28_v12  }
  0x5f   :  { %130 = vperm.xlu0 %1110, %v35_v13  }
  0x61   :  { %1100 = vset.pattern.permute.xlu1 %v1117_v0 }
  0x62   :  { %323 = vperm.xlu1 %1100, %v28_v12  }
  0x63   :  { %1115 = vset.pattern.permute.xlu0 %v1117_v0 }
  0x64   :  { %351 = vperm.xlu0 %1115, %v35_v13  }
  0x66   :  { %387 = vperm.xlu1 %1100, %v44_v1   ;;  %v34_v1 = vld [vmem:[%s1850_s0 + $0x70] sm:$0xff] }
  0x6a   :  { %1101 = vset.pattern.permute.xlu1 %v1119_v10 }
  0x6b   :  { %180 = vperm.xlu1 %1101, %v45_v14  }
  0x6f   :  { %1102 = vset.pattern.permute.xlu1 %v1117_v0 }
  0x70   :  { %391 = vperm.xlu1 %1102, %v45_v14  }
  0x74   :  { %1103 = vset.pattern.permute.xlu1 %v1119_v10 }
  0x75   :  { %105 = vperm.xlu1 %1103, %v30_v15  }
  0x79   :  { %1104 = vset.pattern.permute.xlu1 %v1117_v0 }
  0x7a   :  { %331 = vperm.xlu1 %1104, %v30_v15  }
  0x7e   :  { %395 = vperm.xlu1 %1104, %v46_v8  }
  0x81   :  { %v292_v17 = vpop.permute.xlu1 %291  ;;  %v296_v18 = vpop.permute.xlu0 %295 }
  0x82   :  { %1105 = vset.pattern.permute.xlu1 %v1119_v10  ;;  %v429_v47 = vmul.f32 %v1457_v40, %v292_v17  ;;  %v430_v51 = vmul.f32 %v1448_v35, %v292_v17  ;;  %v431_v59 = vmul.f32 %v1457_v40, %v296_v18  ;;  %v432_v60 = vmul.f32 %v1448_v35, %v296_v18 }
  0x83   :  { %190 = vperm.xlu1 %1105, %v47_v16  }
  0x85   :  { %v356_v19 = vpop.permute.xlu1 %355  ;;  %v1426_v20 = vpop.permute.xlu0 %303 }
  0x86   :  { %v461_v3 = vmul.f32 %v1457_v40, %v356_v19  ;;  %v462_v4 = vmul.f32 %v1448_v35, %v356_v19 }
  0x87   :  { %1106 = vset.pattern.permute.xlu1 %v1117_v0 }
  0x88   :  { %399 = vperm.xlu1 %1106, %v47_v16  }
  0x89   :  { %v1429_v21 = vpop.permute.xlu0 %311 }
  0x8a   :  { %v141_v22 = vpop.permute.xlu1 %140 }
  0x8b   :  { %v259_v44 = vmul.f32 %v1450_v36, %v141_v22  ;;  %v258_v52 = vmul.f32 %v1461_v42, %v141_v22 }
  0x8c   :  { %1107 = vset.pattern.permute.xlu1 %v1119_v10 }
  0x8d   :  { %115 = vperm.xlu1 %1107, %v32_v23   ;;  %v1435_v25 = vpop.permute.xlu0 %319 }
  0x8f   :  { %v360_v26 = vpop.permute.xlu1 %359 }
  0x90   :  { %v464_v41 = vmul.f32 %v1448_v35, %v360_v26  ;;  %v463_v45 = vmul.f32 %v1457_v40, %v360_v26 }
  0x91   :  { %1108 = vset.pattern.permute.xlu1 %v1117_v0  ;;  %v1438_v28 = vpop.permute.xlu0 %327 }
  0x92   :  { %339 = vperm.xlu1 %1108, %v32_v23   ;;  %v528_v48 = vadd.f32 %v464_v41, %v259_v44  ;;  %v527_v55 = vadd.f32 %v463_v45, %v258_v52 }
  0x94   :  { %v66_v30 = vpop.permute.xlu1 %65  ;;  %v604_v2 = vadd.f32 %v1469_v50, %v528_v48  ;;  %v603_v16 = vadd.f32 %v1476_v58, %v527_v55 }
  0x95   :  { %v1446_v33 = vpop.permute.xlu0 %335  ;;  %v228_v8 = vmul.f32 %v1461_v42, %v66_v30  ;;  %v229_v13 = vmul.f32 %v1450_v36, %v66_v30 }
  0x96   :  { %403 = vperm.xlu1 %1108, %v48_v9   ;;  %v668_v23 = vmax.f32 %v604_v2, 0.0 }
  0x99   :  { %v300_v38 = vpop.permute.xlu1 %299  ;;  %v1455_v39 = vpop.permute.xlu0 %343 }
  0x9a   :  { %1109 = vset.pattern.permute.xlu1 %v1119_v10  ;;  %v433_v61 = vmul.f32 %v1457_v40, %v300_v38  ;;  %v434_v9 = vmul.f32 %v1448_v35, %v300_v38 }
  0x9b   :  { %200 = vperm.xlu1 %1109, %v49_v37  }
  0x9c   :  { %v497_v17 = vadd.f32 %v433_v61, %v228_v8  ;;  %v498_v30 = vadd.f32 %v434_v9, %v229_v13 }
  0x9d   :  { %v364_v46 = vpop.permute.xlu1 %363 }
  0x9e   :  { %v56_v49 = vpop.permute.xlu0 %55  ;;  %v465_v45 = vmul.f32 %v1457_v40, %v364_v46 }
  0x9f   :  { %v224_v53 = vmul.f32 %v1461_v42, %v56_v49  ;;  %v225_v54 = vmul.f32 %v1450_v36, %v56_v49  ;;  %1111 = vset.pattern.permute.xlu1 %v1117_v0 }
  0xa0   :  { %407 = vperm.xlu1 %1111, %v49_v37  }
  0xa1   :  { %v493_v56 = vadd.f32 %v429_v47, %v224_v53  ;;  %v494_v57 = vadd.f32 %v430_v51, %v225_v54  ;;  %v466_v47 = vmul.f32 %v1448_v35, %v364_v46 }
  0xa2   :  { %v136_v62 = vpop.permute.xlu0 %135  ;;  %v151_v63 = vpop.permute.xlu1 %150 }
  0xa3   :  { %v256_v6 = vmul.f32 %v1461_v42, %v136_v62  ;;  %v257_v7 = vmul.f32 %v1450_v36, %v136_v62  ;;  %v570_v11 = vadd.f32 %v1469_v50, %v494_v57  ;;  %v569_v12 = vadd.f32 %v1476_v58, %v493_v56 }
  0xa4   :  { %1112 = vset.pattern.permute.xlu1 %v1119_v10  ;;  %v263_v32 = vmul.f32 %v1450_v36, %v151_v63  ;;  %v262_v48 = vmul.f32 %v1461_v42, %v151_v63  ;;  %v435_v56 = vmul.f32 %v1457_v40, %v1426_v20  ;;  %v667_v63 = vmax.f32 %v603_v16, 0.0 }
  0xa5   :  { %v525_v14 = vadd.f32 %v461_v3, %v256_v6  ;;  %125 = vperm.xlu1 %1112, %v34_v1   ;;  %v526_v15 = vadd.f32 %v462_v4, %v257_v7  ;;  %v634_v19 = vmax.f32 %v570_v11, 0.0  ;;  %v633_v22 = vmax.f32 %v569_v12, 0.0 }
  0xa6   :  { %v61_v18 = vpop.permute.xlu0 %60  ;;  %v573_v4 = vadd.f32 %v1476_v58, %v497_v17 }
  0xa7   :  { %v226_v24 = vmul.f32 %v1461_v42, %v61_v18  ;;  %v227_v26 = vmul.f32 %v1450_v36, %v61_v18  ;;  %v368_v27 = vpop.permute.xlu1 %367  ;;  %v602_v29 = vadd.f32 %v1469_v50, %v526_v15  ;;  %v601_v31 = vadd.f32 %v1476_v58, %v525_v14  ;;  %800 = vmatprep.mubr.f32.mxu0 %v634_v19 }
  0xa8   :  { %v467_v34 = vmul.f32 %v1457_v40, %v368_v27  ;;  %v468_v37 = vmul.f32 %v1448_v35, %v368_v27  ;;  %801 = vmatmul.mubr.f32.vlgmr.msra.gmra.mrb[0].mxu0 %v633_v22  ;;  %v637_v27 = vmax.f32 %v573_v4, 0.0 }
  0xa9   :  { %v495_v38 = vadd.f32 %v431_v59, %v226_v24  ;;  %v496_v41 = vadd.f32 %v432_v60, %v227_v26  ;;  %1113 = vset.pattern.permute.xlu1 %v1117_v0  ;;  %v666_v43 = vmax.f32 %v602_v29, 0.0  ;;  %v665_v44 = vmax.f32 %v601_v31, 0.0 }
  0xaa   :  { %v532_v49 = vadd.f32 %v468_v37, %v263_v32  ;;  %v146_v51 = vpop.permute.xlu0 %145  ;;  %347 = vperm.xlu1 %1113, %v34_v1   ;;  %v531_v57 = vadd.f32 %v467_v34, %v262_v48  ;;  %v574_v59 = vadd.f32 %v1469_v50, %v498_v30  ;;  %v436_v60 = vmul.f32 %v1448_v35, %v1426_v20 }
  0xab   :  { %v260_v52 = vmul.f32 %v1461_v42, %v146_v51  ;;  %v261_v53 = vmul.f32 %v1450_v36, %v146_v51  ;;  %880 = vmatprep.mubr.f32.mxu1 %v666_v43  ;;  %v572_v54 = vadd.f32 %v1469_v50, %v496_v41  ;;  %v571_v55 = vadd.f32 %v1476_v58, %v495_v38 }
  0xac   :  { %881 = vmatmul.mubr.f32.vlgmr.msra.gmra.mrb[0].mxu1 %v665_v44  ;;  %v76_v46 = vpop.permute.xlu1 %75  ;;  %v608_v6 = vadd.f32 %v1469_v50, %v532_v49  ;;  %v638_v12 = vmax.f32 %v574_v59, 0.0  ;;  %v607_v13 = vadd.f32 %v1476_v58, %v531_v57  ;;  %v439_v38 = vmul.f32 %v1457_v40, %v1429_v21 }
  0xad   :  { %v529_v61 = vadd.f32 %v465_v45, %v260_v52  ;;  %v530_v62 = vadd.f32 %v466_v47, %v261_v53  ;;  %885 = vmatprep.mubr.f32.mxu1 %v668_v23  ;;  %v636_v2 = vmax.f32 %v572_v54, 0.0  ;;  %v635_v3 = vmax.f32 %v571_v55, 0.0 }
  0xae   :  { %v71_v1 = vpop.permute.xlu0 %70  ;;  %411 = vperm.xlu1 %1113, %v1400_v5   ;;  %v232_v11 = vmul.f32 %v1461_v42, %v76_v46  ;;  %v51_v5 = vld [vmem:[%s1850_s0 + $0xf8] sm:$0xff]  ;;  %v233_v19 = vmul.f32 %v1450_v36, %v76_v46  ;;  %v672_v29 = vmax.f32 %v608_v6, 0.0  ;;  %v671_v44 = vmax.f32 %v607_v13, 0.0 }
  0xaf   :  { %v230_v7 = vmul.f32 %v1461_v42, %v71_v1  ;;  %v231_v8 = vmul.f32 %v1450_v36, %v71_v1  ;;  %v606_v9 = vadd.f32 %v1469_v50, %v530_v62  ;;  %v605_v20 = vadd.f32 %v1476_v58, %v529_v61  ;;  %805 = vmatprep.mubr.f32.mxu0 %v636_v2 }
  0xb0   :  { %886 = vmatmul.mubr.f32.gmra.mrb[2].mxu1 %v667_v63  ;;  %806 = vmatmul.mubr.f32.gmra.mrb[2].mxu0 %v635_v3 }
  0xb1   :  { %v499_v14 = vadd.f32 %v435_v56, %v230_v7  ;;  %v500_v15 = vadd.f32 %v436_v60, %v231_v8  ;;  %v308_v16 = vpop.permute.xlu1 %307  ;;  %v670_v17 = vmax.f32 %v606_v9, 0.0  ;;  %v669_v18 = vmax.f32 %v605_v20, 0.0  ;;  %810 = vmatprep.mubr.f32.mxu0 %v638_v12 }
  0xb2   :  { %v437_v22 = vmul.f32 %v1457_v40, %v308_v16  ;;  %v438_v23 = vmul.f32 %v1448_v35, %v308_v16  ;;  %v156_v24 = vpop.permute.xlu0 %155  ;;  %1114 = vset.pattern.permute.xlu1 %v1119_v10  ;;  %v440_v10 = vmul.f32 %v1448_v35, %v1429_v21 }
  0xb3   :  { %v264_v26 = vmul.f32 %v1461_v42, %v156_v24  ;;  %210 = vperm.xlu1 %1114, %v51_v5   ;;  %890 = vmatprep.mubr.f32.mxu1 %v670_v17  ;;  %v576_v31 = vadd.f32 %v1469_v50, %v500_v15  ;;  %v265_v34 = vmul.f32 %v1450_v36, %v156_v24 }
  0xb4   :  { %v501_v30 = vadd.f32 %v437_v22, %v232_v11  ;;  %v502_v32 = vadd.f32 %v438_v23, %v233_v19  ;;  %891 = vmatmul.mubr.f32.gmra.mrb[4].mxu1 %v669_v18  ;;  %v575_v37 = vadd.f32 %v1476_v58, %v499_v14  ;;  %811 = vmatmul.mubr.f32.gmra.mrb[4].mxu0 %v637_v27 }
  0xb5   :  { %895 = vmatprep.mubr.f32.mxu1 %v672_v29  ;;  %v372_v41 = vpop.permute.xlu1 %371  ;;  %v640_v43 = vmax.f32 %v576_v31, 0.0  ;;  %v444_v14 = vmul.f32 %v1448_v35, %v1435_v25  ;;  %v443_v23 = vmul.f32 %v1457_v40, %v1435_v25 }
  0xb6   :  { %v469_v45 = vmul.f32 %v1457_v40, %v372_v41  ;;  %v470_v47 = vmul.f32 %v1448_v35, %v372_v41  ;;  %v81_v48 = vpop.permute.xlu0 %80  ;;  %v639_v49 = vmax.f32 %v575_v37, 0.0  ;;  %v578_v51 = vadd.f32 %v1469_v50, %v502_v32 }
  0xb7   :  { %v234_v52 = vmul.f32 %v1461_v42, %v81_v48  ;;  %v235_v53 = vmul.f32 %v1450_v36, %v81_v48  ;;  %1116 = vset.pattern.permute.xlu1 %v1117_v0  ;;  %815 = vmatprep.mubr.f32.mxu0 %v640_v43  ;;  %v577_v21 = vadd.f32 %v1476_v58, %v501_v30 }
  0xb8   :  { %v533_v54 = vadd.f32 %v469_v45, %v264_v26  ;;  %v534_v55 = vadd.f32 %v470_v47, %v265_v34  ;;  %415 = vperm.xlu1 %1116, %v51_v5   ;;  %896 = vmatmul.mubr.f32.gmra.mrb[6].mxu1 %v671_v44  ;;  %v642_v56 = vmax.f32 %v578_v51, 0.0 }
  0xb9   :  { %v503_v57 = vadd.f32 %v439_v38, %v234_v52  ;;  %v504_v46 = vadd.f32 %v440_v10, %v235_v53  ;;  %816 = vmatmul.mubr.f32.gmra.mrb[6].mxu0 %v639_v49  ;;  %v641_v62 = vmax.f32 %v577_v21, 0.0 }
  0xba   :  { %820 = vmatprep.mubr.f32.mxu0 %v642_v56  ;;  %v161_v59 = vpop.permute.xlu1 %160  ;;  %v610_v60 = vadd.f32 %v1469_v50, %v534_v55  ;;  %v609_v61 = vadd.f32 %v1476_v58, %v533_v54  ;;  %v166_v63 = vpop.permute.xlu0 %165 }
  0xbb   :  { %v580_v2 = vadd.f32 %v1469_v50, %v504_v46  ;;  %v579_v3 = vadd.f32 %v1476_v58, %v503_v57  ;;  %v266_v8 = vmul.f32 %v1461_v42, %v161_v59  ;;  %v267_v9 = vmul.f32 %v1450_v36, %v161_v59 }
  0xbc   :  { %v674_v0 = vmax.f32 %v610_v60, 0.0  ;;  %v673_v1 = vmax.f32 %v609_v61, 0.0  ;;  %v268_v38 = vmul.f32 %v1461_v42, %v166_v63  ;;  %v269_v25 = vmul.f32 %v1450_v36, %v166_v63 }
  0xbd   :  { %821 = vmatmul.mubr.f32.gmra.mrb[8].mxu0 %v641_v62  ;;  %v644_v4 = vmax.f32 %v580_v2, 0.0  ;;  %v643_v6 = vmax.f32 %v579_v3, 0.0 }
  0xbe   :  { %900 = vmatprep.mubr.f32.mxu1 %v674_v0  ;;  %v91_v12 = vpop.permute.xlu0 %90 }
  0xbf   :  { %901 = vmatmul.mubr.f32.gmra.mrb[8].mxu1 %v673_v1  ;;  %v376_v7 = vpop.permute.xlu1 %375  ;;  %825 = vmatprep.mubr.f32.mxu0 %v644_v4  ;;  %v239_v15 = vmul.f32 %v1450_v36, %v91_v12  ;;  %v238_v24 = vmul.f32 %v1461_v42, %v91_v12 }
  0xc0   :  { %v471_v20 = vmul.f32 %v1457_v40, %v376_v7  ;;  %v472_v11 = vmul.f32 %v1448_v35, %v376_v7 }
  0xc1   :  { %826 = vmatmul.mubr.f32.gmra.mrb[10].mxu0 %v643_v6  ;;  %v508_v26 = vadd.f32 %v444_v14, %v239_v15  ;;  %v507_v34 = vadd.f32 %v443_v23, %v238_v24 }
  0xc2   :  { %v535_v5 = vadd.f32 %v471_v20, %v266_v8  ;;  %v536_v13 = vadd.f32 %v472_v11, %v267_v9  ;;  %v176_v61 = vpop.permute.xlu0 %175  ;;  %v448_v20 = vmul.f32 %v1448_v35, %v1438_v28 }
  0xc3   :  { %v584_v37 = vadd.f32 %v1469_v50, %v508_v26  ;;  %v583_v51 = vadd.f32 %v1476_v58, %v507_v34  ;;  %v272_v23 = vmul.f32 %v1461_v42, %v176_v61  ;;  %v273_v24 = vmul.f32 %v1450_v36, %v176_v61 }
  0xc4   :  { %v86_v16 = vpop.permute.xlu1 %85  ;;  %v612_v17 = vadd.f32 %v1469_v50, %v536_v13  ;;  %v611_v18 = vadd.f32 %v1476_v58, %v535_v5  ;;  %v447_v13 = vmul.f32 %v1457_v40, %v1438_v28 }
  0xc5   :  { %v236_v29 = vmul.f32 %v1461_v42, %v86_v16  ;;  %v237_v31 = vmul.f32 %v1450_v36, %v86_v16  ;;  %v648_v49 = vmax.f32 %v584_v37, 0.0  ;;  %v647_v46 = vmax.f32 %v583_v51, 0.0 }
  0xc6   :  { %v676_v19 = vmax.f32 %v612_v17, 0.0  ;;  %v675_v22 = vmax.f32 %v611_v18, 0.0  ;;  %v101_v6 = vpop.permute.xlu0 %100 }
  0xc7   :  { %v243_v11 = vmul.f32 %v1450_v36, %v101_v6  ;;  %v242_v14 = vmul.f32 %v1461_v42, %v101_v6 }
  0xc8   :  { %905 = vmatprep.mubr.f32.mxu1 %v676_v19 }
  0xc9   :  { %906 = vmatmul.mubr.f32.gmra.mrb[10].mxu1 %v675_v22  ;;  %v316_v27 = vpop.permute.xlu1 %315  ;;  %v512_v15 = vadd.f32 %v448_v20, %v243_v11  ;;  %v511_v28 = vadd.f32 %v447_v13, %v242_v14 }
  0xca   :  { %v441_v30 = vmul.f32 %v1457_v40, %v316_v27  ;;  %v442_v32 = vmul.f32 %v1448_v35, %v316_v27 }
  0xcc   :  { %v505_v10 = vadd.f32 %v441_v30, %v236_v29  ;;  %v506_v41 = vadd.f32 %v442_v32, %v237_v31  ;;  %v588_v31 = vadd.f32 %v1469_v50, %v512_v15 }
  0xcd   :  { %v380_v43 = vpop.permute.xlu1 %379 }
  0xce   :  { %v473_v44 = vmul.f32 %v1457_v40, %v380_v43  ;;  %v474_v45 = vmul.f32 %v1448_v35, %v380_v43  ;;  %v582_v47 = vadd.f32 %v1469_v50, %v506_v41  ;;  %v581_v48 = vadd.f32 %v1476_v58, %v505_v10 }
  0xcf   :  { %v587_v43 = vadd.f32 %v1476_v58, %v511_v28 }
  0xd0   :  { %v537_v52 = vadd.f32 %v473_v44, %v268_v38  ;;  %v538_v53 = vadd.f32 %v474_v45, %v269_v25  ;;  %v646_v21 = vmax.f32 %v582_v47, 0.0  ;;  %v645_v54 = vmax.f32 %v581_v48, 0.0 }
  0xd1   :  { %v652_v45 = vmax.f32 %v588_v31, 0.0 }
  0xd2   :  { %830 = vmatprep.mubr.f32.mxu0 %v646_v21  ;;  %v171_v55 = vpop.permute.xlu1 %170  ;;  %v614_v56 = vadd.f32 %v1469_v50, %v538_v53  ;;  %v613_v57 = vadd.f32 %v1476_v58, %v537_v52  ;;  %v651_v52 = vmax.f32 %v587_v43, 0.0  ;;  %v186_v53 = vpop.permute.xlu0 %185 }
  0xd3   :  { %831 = vmatmul.mubr.f32.gmra.mrb[12].mxu0 %v645_v54  ;;  %v270_v63 = vmul.f32 %v1461_v42, %v171_v55  ;;  %v271_v0 = vmul.f32 %v1450_v36, %v171_v55  ;;  %v276_v14 = vmul.f32 %v1461_v42, %v186_v53  ;;  %v277_v15 = vmul.f32 %v1450_v36, %v186_v53 }
  0xd4   :  { %v678_v59 = vmax.f32 %v614_v56, 0.0  ;;  %v677_v60 = vmax.f32 %v613_v57, 0.0  ;;  %835 = vmatprep.mubr.f32.mxu0 %v648_v49 }
  0xd6   :  { %910 = vmatprep.mubr.f32.mxu1 %v678_v59 }
  0xd7   :  { %911 = vmatmul.mubr.f32.gmra.mrb[12].mxu1 %v677_v60  ;;  %v384_v62 = vpop.permute.xlu1 %383  ;;  %836 = vmatmul.mubr.f32.gmra.mrb[14].mxu0 %v647_v46  ;;  %v111_v60 = vpop.permute.xlu0 %110 }
  0xd8   :  { %v475_v1 = vmul.f32 %v1457_v40, %v384_v62  ;;  %v476_v2 = vmul.f32 %v1448_v35, %v384_v62  ;;  %v246_v6 = vmul.f32 %v1461_v42, %v111_v60 }
  0xda   :  { %v539_v3 = vadd.f32 %v475_v1, %v270_v63  ;;  %v540_v4 = vadd.f32 %v476_v2, %v271_v0  ;;  %v452_v0 = vmul.f32 %v1448_v35, %v1446_v33  ;;  %v247_v1 = vmul.f32 %v1450_v36, %v111_v60 }
  0xdc   :  { %v96_v7 = vpop.permute.xlu1 %95  ;;  %v616_v8 = vadd.f32 %v1469_v50, %v540_v4  ;;  %v615_v9 = vadd.f32 %v1476_v58, %v539_v3  ;;  %v451_v4 = vmul.f32 %v1457_v40, %v1446_v33 }
  0xdd   :  { %v240_v17 = vmul.f32 %v1461_v42, %v96_v7  ;;  %v241_v18 = vmul.f32 %v1450_v36, %v96_v7  ;;  %v516_v7 = vadd.f32 %v452_v0, %v247_v1 }
  0xde   :  { %v680_v12 = vmax.f32 %v616_v8, 0.0  ;;  %v679_v5 = vmax.f32 %v615_v9, 0.0  ;;  %v515_v33 = vadd.f32 %v451_v4, %v246_v6 }
  0xe0   :  { %915 = vmatprep.mubr.f32.mxu1 %v680_v12 }
  0xe1   :  { %916 = vmatmul.mubr.f32.gmra.mrb[14].mxu1 %v679_v5  ;;  %v324_v16 = vpop.permute.xlu1 %323 }
  0xe2   :  { %v445_v19 = vmul.f32 %v1457_v40, %v324_v16  ;;  %v446_v22 = vmul.f32 %v1448_v35, %v324_v16 }
  0xe4   :  { %v509_v26 = vadd.f32 %v445_v19, %v240_v17  ;;  %v510_v27 = vadd.f32 %v446_v22, %v241_v18  ;;  %v592_v17 = vadd.f32 %v1469_v50, %v516_v7 }
  0xe5   :  { %v388_v29 = vpop.permute.xlu1 %387 }
  0xe6   :  { %v477_v30 = vmul.f32 %v1457_v40, %v388_v29  ;;  %v478_v32 = vmul.f32 %v1448_v35, %v388_v29  ;;  %v586_v34 = vadd.f32 %v1469_v50, %v510_v27  ;;  %v585_v37 = vadd.f32 %v1476_v58, %v509_v26 }
  0xe7   :  { %v591_v29 = vadd.f32 %v1476_v58, %v515_v33 }
  0xe8   :  { %v541_v38 = vadd.f32 %v477_v30, %v272_v23  ;;  %v542_v25 = vadd.f32 %v478_v32, %v273_v24  ;;  %v650_v10 = vmax.f32 %v586_v34, 0.0  ;;  %v649_v41 = vmax.f32 %v585_v37, 0.0  ;;  %v196_v37 = vpop.permute.xlu0 %195 }
  0xe9   :  { %v656_v30 = vmax.f32 %v592_v17, 0.0  ;;  %v280_v4 = vmul.f32 %v1461_v42, %v196_v37  ;;  %v281_v6 = vmul.f32 %v1450_v36, %v196_v37 }
  0xea   :  { %840 = vmatprep.mubr.f32.mxu0 %v650_v10  ;;  %v181_v44 = vpop.permute.xlu1 %180  ;;  %v618_v47 = vadd.f32 %v1469_v50, %v542_v25  ;;  %v617_v48 = vadd.f32 %v1476_v58, %v541_v38  ;;  %v655_v10 = vmax.f32 %v591_v29, 0.0 }
  0xeb   :  { %841 = vmatmul.mubr.f32.gmra.mrb[16].mxu0 %v649_v41  ;;  %v274_v54 = vmul.f32 %v1461_v42, %v181_v44  ;;  %v275_v55 = vmul.f32 %v1450_v36, %v181_v44 }
  0xec   :  { %845 = vmatprep.mubr.f32.mxu0 %v652_v45  ;;  %v682_v49 = vmax.f32 %v618_v47, 0.0  ;;  %v681_v51 = vmax.f32 %v617_v48, 0.0  ;;  %v121_v48 = vpop.permute.xlu0 %120 }
  0xee   :  { %920 = vmatprep.mubr.f32.mxu1 %v682_v49 }
  0xef   :  { %846 = vmatmul.mubr.f32.gmra.mrb[18].mxu0 %v651_v52  ;;  %921 = vmatmul.mubr.f32.gmra.mrb[16].mxu1 %v681_v51  ;;  %v392_v21 = vpop.permute.xlu1 %391 }
  0xf0   :  { %v479_v56 = vmul.f32 %v1457_v40, %v392_v21  ;;  %v480_v57 = vmul.f32 %v1448_v35, %v392_v21 }
  0xf2   :  { %v543_v46 = vadd.f32 %v479_v56, %v274_v54  ;;  %v544_v59 = vadd.f32 %v480_v57, %v275_v55  ;;  %v456_v54 = vmul.f32 %v1448_v35, %v1455_v39  ;;  %v251_v55 = vmul.f32 %v1450_v36, %v121_v48 }
  0xf4   :  { %v106_v61 = vpop.permute.xlu1 %105  ;;  %v620_v62 = vadd.f32 %v1469_v50, %v544_v59  ;;  %v619_v63 = vadd.f32 %v1476_v58, %v543_v46  ;;  %v455_v46 = vmul.f32 %v1457_v40, %v1455_v39  ;;  %v250_v59 = vmul.f32 %v1461_v42, %v121_v48 }
  0xf5   :  { %v244_v9 = vmul.f32 %v1461_v42, %v106_v61  ;;  %v245_v20 = vmul.f32 %v1450_v36, %v106_v61  ;;  %v520_v60 = vadd.f32 %v456_v54, %v251_v55 }
  0xf6   :  { %v684_v2 = vmax.f32 %v620_v62, 0.0  ;;  %v683_v3 = vmax.f32 %v619_v63, 0.0  ;;  %v519_v39 = vadd.f32 %v455_v46, %v250_v59 }
  0xf8   :  { %925 = vmatprep.mubr.f32.mxu1 %v684_v2 }
  0xf9   :  { %926 = vmatmul.mubr.f32.gmra.mrb[18].mxu1 %v683_v3  ;;  %v332_v8 = vpop.permute.xlu1 %331 }
  0xfa   :  { %v449_v11 = vmul.f32 %v1457_v40, %v332_v8  ;;  %v450_v12 = vmul.f32 %v1448_v35, %v332_v8  ;;  %v596_v8 = vadd.f32 %v1469_v50, %v520_v60 }
  0xfc   :  { %v513_v5 = vadd.f32 %v449_v11, %v244_v9  ;;  %v514_v13 = vadd.f32 %v450_v12, %v245_v20  ;;  %v206_v9 = vpop.permute.xlu0 %205 }
  0xfd   :  { %v396_v16 = vpop.permute.xlu1 %395  ;;  %v284_v46 = vmul.f32 %v1461_v42, %v206_v9  ;;  %v285_v59 = vmul.f32 %v1450_v36, %v206_v9 }
  0xfe   :  { %v481_v18 = vmul.f32 %v1457_v40, %v396_v16  ;;  %v482_v19 = vmul.f32 %v1448_v35, %v396_v16  ;;  %v590_v22 = vadd.f32 %v1469_v50, %v514_v13  ;;  %v589_v23 = vadd.f32 %v1476_v58, %v513_v5 }
  0xff   :  { %v595_v16 = vadd.f32 %v1476_v58, %v519_v39 }
 0x100   :  { %v545_v24 = vadd.f32 %v481_v18, %v276_v14  ;;  %v546_v26 = vadd.f32 %v482_v19, %v277_v15  ;;  %v654_v27 = vmax.f32 %v590_v22, 0.0  ;;  %v653_v28 = vmax.f32 %v589_v23, 0.0  ;;  %v131_v23 = vpop.permute.xlu0 %130 }
 0x101   :  { %v660_v18 = vmax.f32 %v596_v8, 0.0  ;;  %v254_v48 = vmul.f32 %v1461_v42, %v131_v23 }
 0x102   :  { %850 = vmatprep.mubr.f32.mxu0 %v654_v27  ;;  %v191_v31 = vpop.permute.xlu1 %190  ;;  %v622_v32 = vadd.f32 %v1469_v50, %v546_v26  ;;  %v621_v34 = vadd.f32 %v1476_v58, %v545_v24  ;;  %v659_v27 = vmax.f32 %v595_v16, 0.0 }
 0x103   :  { %851 = vmatmul.mubr.f32.gmra.mrb[20].mxu0 %v653_v28  ;;  %v278_v43 = vmul.f32 %v1461_v42, %v191_v31  ;;  %v279_v44 = vmul.f32 %v1450_v36, %v191_v31 }
 0x104   :  { %855 = vmatprep.mubr.f32.mxu0 %v656_v30  ;;  %v686_v38 = vmax.f32 %v622_v32, 0.0  ;;  %v685_v25 = vmax.f32 %v621_v34, 0.0  ;;  %v352_v34 = vpop.permute.xlu0 %351 }
 0x106   :  { %930 = vmatprep.mubr.f32.mxu1 %v686_v38 }
 0x107   :  { %856 = vmatmul.mubr.f32.gmra.mrb[22].mxu0 %v655_v10  ;;  %931 = vmatmul.mubr.f32.gmra.mrb[20].mxu1 %v685_v25  ;;  %v400_v41 = vpop.permute.xlu1 %399 }
 0x108   :  { %v483_v45 = vmul.f32 %v1457_v40, %v400_v41  ;;  %v484_v47 = vmul.f32 %v1448_v35, %v400_v41 }
 0x10a   :  { %v547_v49 = vadd.f32 %v483_v45, %v278_v43  ;;  %v548_v51 = vadd.f32 %v484_v47, %v279_v44  ;;  %v255_v43 = vmul.f32 %v1450_v36, %v131_v23  ;;  %v460_v44 = vmul.f32 %v1448_v35, %v352_v34 }
 0x10c   :  { %v116_v52 = vpop.permute.xlu1 %115  ;;  %v624_v53 = vadd.f32 %v1469_v50, %v548_v51  ;;  %v623_v21 = vadd.f32 %v1476_v58, %v547_v49  ;;  %v459_v49 = vmul.f32 %v1457_v40, %v352_v34  ;;  %v524_v51 = vadd.f32 %v460_v44, %v255_v43 }
 0x10d   :  { %v248_v62 = vmul.f32 %v1461_v42, %v116_v52  ;;  %v249_v63 = vmul.f32 %v1450_v36, %v116_v52 }
 0x10e   :  { %v688_v56 = vmax.f32 %v624_v53, 0.0  ;;  %v687_v57 = vmax.f32 %v623_v21, 0.0  ;;  %v523_v60 = vadd.f32 %v459_v49, %v254_v48 }
 0x110   :  { %935 = vmatprep.mubr.f32.mxu1 %v688_v56 }
 0x111   :  { %936 = vmatmul.mubr.f32.gmra.mrb[22].mxu1 %v687_v57  ;;  %v340_v61 = vpop.permute.xlu1 %339 }
 0x112   :  { %v453_v0 = vmul.f32 %v1457_v40, %v340_v61  ;;  %v454_v1 = vmul.f32 %v1448_v35, %v340_v61 }
 0x114   :  { %v517_v2 = vadd.f32 %v453_v0, %v248_v62  ;;  %v518_v3 = vadd.f32 %v454_v1, %v249_v63  ;;  %v600_v62 = vadd.f32 %v1469_v50, %v524_v51 }
 0x115   :  { %v404_v7 = vpop.permute.xlu1 %403 }
 0x116   :  { %v485_v20 = vmul.f32 %v1457_v40, %v404_v7  ;;  %v486_v11 = vmul.f32 %v1448_v35, %v404_v7  ;;  %v594_v12 = vadd.f32 %v1469_v50, %v518_v3  ;;  %v593_v5 = vadd.f32 %v1476_v58, %v517_v2 }
 0x117   :  { %v599_v7 = vadd.f32 %v1476_v58, %v523_v60  ;;  %v664_v9 = vmax.f32 %v600_v62, 0.0 }
 0x118   :  { %v549_v13 = vadd.f32 %v485_v20, %v280_v4  ;;  %v550_v14 = vadd.f32 %v486_v11, %v281_v6  ;;  %v658_v15 = vmax.f32 %v594_v12, 0.0  ;;  %v657_v33 = vmax.f32 %v593_v5, 0.0 }
 0x11a   :  { %860 = vmatprep.mubr.f32.mxu0 %v658_v15  ;;  %v201_v17 = vpop.permute.xlu1 %200  ;;  %v626_v19 = vadd.f32 %v1469_v50, %v550_v14  ;;  %v625_v22 = vadd.f32 %v1476_v58, %v549_v13  ;;  %v663_v13 = vmax.f32 %v599_v7, 0.0 }
 0x11b   :  { %861 = vmatmul.mubr.f32.gmra.mrb[24].mxu0 %v657_v33  ;;  %v282_v29 = vmul.f32 %v1461_v42, %v201_v17  ;;  %v283_v31 = vmul.f32 %v1450_v36, %v201_v17 }
 0x11c   :  { %865 = vmatprep.mubr.f32.mxu0 %v660_v18  ;;  %v690_v24 = vmax.f32 %v626_v19, 0.0  ;;  %v689_v26 = vmax.f32 %v625_v22, 0.0 }
 0x11e   :  { %940 = vmatprep.mubr.f32.mxu1 %v690_v24 }
 0x11f   :  { %866 = vmatmul.mubr.f32.gmra.mrb[26].mxu0 %v659_v27  ;;  %941 = vmatmul.mubr.f32.gmra.mrb[24].mxu1 %v689_v26  ;;  %v408_v28 = vpop.permute.xlu1 %407 }
 0x120   :  { %v487_v30 = vmul.f32 %v1457_v40, %v408_v28  ;;  %v488_v32 = vmul.f32 %v1448_v35, %v408_v28 }
 0x122   :  { %v551_v37 = vadd.f32 %v487_v30, %v282_v29  ;;  %v552_v38 = vadd.f32 %v488_v32, %v283_v31 }
 0x124   :  { %v126_v25 = vpop.permute.xlu1 %125  ;;  %v628_v10 = vadd.f32 %v1469_v50, %v552_v38  ;;  %v627_v41 = vadd.f32 %v1476_v58, %v551_v37 }
 0x125   :  { %v252_v53 = vmul.f32 %v1461_v42, %v126_v25  ;;  %v253_v21 = vmul.f32 %v1450_v36, %v126_v25 }
 0x126   :  { %v692_v45 = vmax.f32 %v628_v10, 0.0  ;;  %v691_v47 = vmax.f32 %v627_v41, 0.0 }
 0x128   :  { %945 = vmatprep.mubr.f32.mxu1 %v692_v45 }
 0x129   :  { %946 = vmatmul.mubr.f32.gmra.mrb[26].mxu1 %v691_v47  ;;  %v348_v52 = vpop.permute.xlu1 %347 }
 0x12a   :  { %v457_v54 = vmul.f32 %v1457_v40, %v348_v52  ;;  %v458_v55 = vmul.f32 %v1448_v35, %v348_v52 }
 0x12c   :  { %v521_v56 = vadd.f32 %v457_v54, %v252_v53  ;;  %v522_v57 = vadd.f32 %v458_v55, %v253_v21 }
 0x12d   :  { %v412_v61 = vpop.permute.xlu1 %411 }
 0x12e   :  { %v489_v63 = vmul.f32 %v1457_v40, %v412_v61  ;;  %v490_v0 = vmul.f32 %v1448_v35, %v412_v61  ;;  %v598_v1 = vadd.f32 %v1469_v50, %v522_v57  ;;  %v597_v2 = vadd.f32 %v1476_v58, %v521_v56 }
 0x130   :  { %v553_v3 = vadd.f32 %v489_v63, %v284_v46  ;;  %v554_v4 = vadd.f32 %v490_v0, %v285_v59  ;;  %v662_v6 = vmax.f32 %v598_v1, 0.0  ;;  %v661_v39 = vmax.f32 %v597_v2, 0.0 }
 0x132   :  { %870 = vmatprep.mubr.f32.mxu0 %v662_v6  ;;  %v211_v8 = vpop.permute.xlu1 %210  ;;  %v630_v20 = vadd.f32 %v1469_v50, %v554_v4  ;;  %v629_v11 = vadd.f32 %v1476_v58, %v553_v3 }
 0x133   :  { %871 = vmatmul.mubr.f32.gmra.mrb[28].mxu0 %v661_v39  ;;  %v286_v15 = vmul.f32 %v1461_v42, %v211_v8  ;;  %v287_v33 = vmul.f32 %v1450_v36, %v211_v8  ;;  %v1688_v42 = vld [vmem:[%s1854_s4] ss:$0 sm:$0xff] }
 0x134   :  { %875 = vmatprep.mubr.f32.mxu0 %v664_v9  ;;  %v694_v12 = vmax.f32 %v630_v20, 0.0  ;;  %v693_v5 = vmax.f32 %v629_v11, 0.0 }
 0x136   :  { %950 = vmatprep.mubr.f32.mxu1 %v694_v12 }
 0x137   :  { %876 = vmatmul.mubr.f32.gmra.mrb[30].mxu0 %v663_v13  ;;  %951 = vmatmul.mubr.f32.gmra.mrb[28].mxu1 %v693_v5  ;;  %v416_v14 = vpop.permute.xlu1 %415 }
 0x138   :  { %v491_v16 = vmul.f32 %v1457_v40, %v416_v14  ;;  %v492_v17 = vmul.f32 %v1448_v35, %v416_v14 }
 0x13a   :  { %v555_v18 = vadd.f32 %v491_v16, %v286_v15  ;;  %v556_v19 = vadd.f32 %v492_v17, %v287_v33 }
 0x13c   :  { %v632_v22 = vadd.f32 %v1469_v50, %v556_v19  ;;  %v631_v23 = vadd.f32 %v1476_v58, %v555_v18 }
 0x13e   :  { %v696_v24 = vmax.f32 %v632_v22, 0.0  ;;  %v695_v26 = vmax.f32 %v631_v23, 0.0 }
 0x140   :  { %955 = vmatprep.mubr.f32.mxu1 %v696_v24 }
 0x141   :  { %956 = vmatmul.mubr.f32.gmra.mrb[30].mxu1 %v695_v26 }
 0x17b   :  { %v802_v36 = vpop.f32.mrb[0].mxu0 }
 0x17c   :  { %v803_v40 = vadd.f32 %v1688_v42, %v802_v36  ;;  %v804_v35 = vpop.f32.mrb[1].mxu0 }
 0x17e   :  { %962 = vst.msk [vmem:[%s1855_s5] sm:$0xff] %vm961_vm0, %v803_v40 }
 0x17f   :  { %v882_v50 = vpop.f32.mrb[0].mxu1 }
 0x180   :  { %v883_v58 = vadd.f32 %v1688_v42, %v882_v50  ;;  %v884_v27 = vpop.f32.mrb[1].mxu1 }
 0x182   :  { %978 = vst.msk [vmem:[%s1855_s5 + $0x80] sm:$0xff] %vm961_vm0, %v883_v58 }
 0x183   :  { %v887_v28 = vpop.f32.mrb[2].mxu1  ;;  %v807_v30 = vpop.f32.mrb[2].mxu0 }
 0x184   :  { %v888_v29 = vadd.f32 %v1688_v42, %v887_v28  ;;  %v889_v31 = vpop.f32.mrb[3].mxu1  ;;  %v808_v32 = vadd.f32 %v1688_v42, %v807_v30  ;;  %v809_v34 = vpop.f32.mrb[3].mxu0 }
 0x186   :  { %979 = vst.msk [vmem:[%s1855_s5 + $0x88] sm:$0xff] %vm961_vm0, %v888_v29  ;;  %963 = vst.msk [vmem:[%s1855_s5 + $0x8] sm:$0xff] %vm961_vm0, %v808_v32 }
 0x187   :  { %v892_v37 = vpop.f32.mrb[4].mxu1  ;;  %v812_v38 = vpop.f32.mrb[4].mxu0 }
 0x188   :  { %v893_v25 = vadd.f32 %v1688_v42, %v892_v37  ;;  %v894_v10 = vpop.f32.mrb[5].mxu1  ;;  %v813_v41 = vadd.f32 %v1688_v42, %v812_v38  ;;  %v814_v43 = vpop.f32.mrb[5].mxu0 }
 0x18a   :  { %980 = vst.msk [vmem:[%s1855_s5 + $0x90] sm:$0xff] %vm961_vm0, %v893_v25  ;;  %964 = vst.msk [vmem:[%s1855_s5 + $0x10] sm:$0xff] %vm961_vm0, %v813_v41 }
 0x18b   :  { %v897_v44 = vpop.f32.mrb[6].mxu1 }
 0x18c   :  { %v898_v45 = vadd.f32 %v1688_v42, %v897_v44  ;;  %v899_v47 = vpop.f32.mrb[7].mxu1  ;;  %v817_v48 = vpop.f32.mrb[6].mxu0 }
 0x18d   :  { %v818_v49 = vadd.f32 %v1688_v42, %v817_v48  ;;  %v819_v51 = vpop.f32.mrb[7].mxu0 }
 0x18e   :  { %981 = vst.msk [vmem:[%s1855_s5 + $0x98] sm:$0xff] %vm961_vm0, %v898_v45 }
 0x18f   :  { %965 = vst.msk [vmem:[%s1855_s5 + $0x18] sm:$0xff] %vm961_vm0, %v818_v49 }
 0x190   :  { %v822_v52 = vpop.f32.mrb[8].mxu0 }
 0x191   :  { %v823_v53 = vadd.f32 %v1688_v42, %v822_v52  ;;  %v824_v21 = vpop.f32.mrb[9].mxu0 }
 0x192   :  { %v902_v54 = vpop.f32.mrb[8].mxu1 }
 0x193   :  { %966 = vst.msk [vmem:[%s1855_s5 + $0x20] sm:$0xff] %vm961_vm0, %v823_v53  ;;  %v903_v55 = vadd.f32 %v1688_v42, %v902_v54  ;;  %v904_v56 = vpop.f32.mrb[9].mxu1 }
 0x194   :  { %v827_v57 = vpop.f32.mrb[10].mxu0 }
 0x195   :  { %982 = vst.msk [vmem:[%s1855_s5 + $0xa0] sm:$0xff] %vm961_vm0, %v903_v55  ;;  %v828_v46 = vadd.f32 %v1688_v42, %v827_v57  ;;  %v829_v59 = vpop.f32.mrb[11].mxu0 }
 0x197   :  { %967 = vst.msk [vmem:[%s1855_s5 + $0x28] sm:$0xff] %vm961_vm0, %v828_v46 }
 0x19c   :  { %v907_v60 = vpop.f32.mrb[10].mxu1 }
 0x19d   :  { %v908_v61 = vadd.f32 %v1688_v42, %v907_v60  ;;  %v909_v62 = vpop.f32.mrb[11].mxu1 }
 0x19f   :  { %983 = vst.msk [vmem:[%s1855_s5 + $0xa8] sm:$0xff] %vm961_vm0, %v908_v61 }
 0x1a6   :  { %v832_v63 = vpop.f32.mrb[12].mxu0 }
 0x1a7   :  { %v833_v0 = vadd.f32 %v1688_v42, %v832_v63  ;;  %v834_v1 = vpop.f32.mrb[13].mxu0 }
 0x1a9   :  { %968 = vst.msk [vmem:[%s1855_s5 + $0x30] sm:$0xff] %vm961_vm0, %v833_v0 }
 0x1aa   :  { %v912_v2 = vpop.f32.mrb[12].mxu1  ;;  %v837_v3 = vpop.f32.mrb[14].mxu0 }
 0x1ab   :  { %v913_v4 = vadd.f32 %v1688_v42, %v912_v2  ;;  %v914_v6 = vpop.f32.mrb[13].mxu1  ;;  %v838_v39 = vadd.f32 %v1688_v42, %v837_v3  ;;  %v839_v7 = vpop.f32.mrb[15].mxu0 }
 0x1ad   :  { %984 = vst.msk [vmem:[%s1855_s5 + $0xb0] sm:$0xff] %vm961_vm0, %v913_v4  ;;  %969 = vst.msk [vmem:[%s1855_s5 + $0x38] sm:$0xff] %vm961_vm0, %v838_v39 }
 0x1b4   :  { %v917_v8 = vpop.f32.mrb[14].mxu1 }
 0x1b5   :  { %v918_v9 = vadd.f32 %v1688_v42, %v917_v8  ;;  %v919_v20 = vpop.f32.mrb[15].mxu1 }
 0x1b7   :  { %985 = vst.msk [vmem:[%s1855_s5 + $0xb8] sm:$0xff] %vm961_vm0, %v918_v9 }
 0x1be   :  { %v842_v11 = vpop.f32.mrb[16].mxu0 }
 0x1bf   :  { %v843_v12 = vadd.f32 %v1688_v42, %v842_v11  ;;  %v844_v5 = vpop.f32.mrb[17].mxu0 }
 0x1c1   :  { %970 = vst.msk [vmem:[%s1855_s5 + $0x40] sm:$0xff] %vm961_vm0, %v843_v12 }
 0x1c2   :  { %v847_v13 = vpop.f32.mrb[18].mxu0  ;;  %v922_v14 = vpop.f32.mrb[16].mxu1 }
 0x1c3   :  { %v848_v15 = vadd.f32 %v1688_v42, %v847_v13  ;;  %v923_v33 = vadd.f32 %v1688_v42, %v922_v14  ;;  %v849_v16 = vpop.f32.mrb[19].mxu0  ;;  %v924_v17 = vpop.f32.mrb[17].mxu1 }
 0x1c5   :  { %971 = vst.msk [vmem:[%s1855_s5 + $0x48] sm:$0xff] %vm961_vm0, %v848_v15  ;;  %986 = vst.msk [vmem:[%s1855_s5 + $0xc0] sm:$0xff] %vm961_vm0, %v923_v33 }
 0x1cc   :  { %v927_v18 = vpop.f32.mrb[18].mxu1 }
 0x1cd   :  { %v928_v19 = vadd.f32 %v1688_v42, %v927_v18  ;;  %v929_v22 = vpop.f32.mrb[19].mxu1 }
 0x1cf   :  { %987 = vst.msk [vmem:[%s1855_s5 + $0xc8] sm:$0xff] %vm961_vm0, %v928_v19 }
 0x1d6   :  { %v852_v23 = vpop.f32.mrb[20].mxu0 }
 0x1d7   :  { %v853_v24 = vadd.f32 %v1688_v42, %v852_v23  ;;  %v854_v26 = vpop.f32.mrb[21].mxu0 }
 0x1d9   :  { %972 = vst.msk [vmem:[%s1855_s5 + $0x50] sm:$0xff] %vm961_vm0, %v853_v24 }
 0x1da   :  { %v857_v36 = vpop.f32.mrb[22].mxu0  ;;  %v932_v40 = vpop.f32.mrb[20].mxu1 }
 0x1db   :  { %v858_v35 = vadd.f32 %v1688_v42, %v857_v36  ;;  %v933_v50 = vadd.f32 %v1688_v42, %v932_v40  ;;  %v859_v58 = vpop.f32.mrb[23].mxu0  ;;  %v934_v27 = vpop.f32.mrb[21].mxu1 }
 0x1dd   :  { %973 = vst.msk [vmem:[%s1855_s5 + $0x58] sm:$0xff] %vm961_vm0, %v858_v35  ;;  %988 = vst.msk [vmem:[%s1855_s5 + $0xd0] sm:$0xff] %vm961_vm0, %v933_v50 }
 0x1e4   :  { %v937_v28 = vpop.f32.mrb[22].mxu1 }
 0x1e5   :  { %v938_v29 = vadd.f32 %v1688_v42, %v937_v28  ;;  %v939_v31 = vpop.f32.mrb[23].mxu1 }
 0x1e7   :  { %989 = vst.msk [vmem:[%s1855_s5 + $0xd8] sm:$0xff] %vm961_vm0, %v938_v29 }
 0x1ee   :  { %v862_v30 = vpop.f32.mrb[24].mxu0 }
 0x1ef   :  { %v863_v32 = vadd.f32 %v1688_v42, %v862_v30  ;;  %v864_v34 = vpop.f32.mrb[25].mxu0 }
 0x1f1   :  { %974 = vst.msk [vmem:[%s1855_s5 + $0x60] sm:$0xff] %vm961_vm0, %v863_v32 }
 0x1f2   :  { %v867_v37 = vpop.f32.mrb[26].mxu0  ;;  %v942_v38 = vpop.f32.mrb[24].mxu1 }
 0x1f3   :  { %v868_v25 = vadd.f32 %v1688_v42, %v867_v37  ;;  %v943_v10 = vadd.f32 %v1688_v42, %v942_v38  ;;  %v869_v41 = vpop.f32.mrb[27].mxu0  ;;  %v944_v43 = vpop.f32.mrb[25].mxu1 }
 0x1f5   :  { %975 = vst.msk [vmem:[%s1855_s5 + $0x68] sm:$0xff] %vm961_vm0, %v868_v25  ;;  %990 = vst.msk [vmem:[%s1855_s5 + $0xe0] sm:$0xff] %vm961_vm0, %v943_v10 }
 0x1fc   :  { %v947_v44 = vpop.f32.mrb[26].mxu1 }
 0x1fd   :  { %v948_v45 = vadd.f32 %v1688_v42, %v947_v44  ;;  %v949_v47 = vpop.f32.mrb[27].mxu1 }
 0x1ff   :  { %991 = vst.msk [vmem:[%s1855_s5 + $0xe8] sm:$0xff] %vm961_vm0, %v948_v45 }
 0x206   :  { %v872_v48 = vpop.f32.mrb[28].mxu0 }
 0x207   :  { %v873_v49 = vadd.f32 %v1688_v42, %v872_v48  ;;  %v874_v51 = vpop.f32.mrb[29].mxu0 }
 0x209   :  { %976 = vst.msk [vmem:[%s1855_s5 + $0x70] sm:$0xff] %vm961_vm0, %v873_v49 }
 0x20a   :  { %v877_v52 = vpop.f32.mrb[30].mxu0  ;;  %v952_v53 = vpop.f32.mrb[28].mxu1 }
 0x20b   :  { %v878_v21 = vadd.f32 %v1688_v42, %v877_v52  ;;  %v953_v54 = vadd.f32 %v1688_v42, %v952_v53  ;;  %v879_v55 = vpop.f32.mrb[31].mxu0  ;;  %v954_v56 = vpop.f32.mrb[29].mxu1 }
 0x20d   :  { %977 = vst.msk [vmem:[%s1855_s5 + $0x78] sm:$0xff] %vm961_vm0, %v878_v21  ;;  %992 = vst.msk [vmem:[%s1855_s5 + $0xf0] sm:$0xff] %vm961_vm0, %v953_v54 }
 0x214   :  { %v957_v57 = vpop.f32.mrb[30].mxu1 }
 0x215   :  { %v958_v46 = vadd.f32 %v1688_v42, %v957_v57  ;;  %v959_v59 = vpop.f32.mrb[31].mxu1 }
 0x217   :  { %993 = vst.msk [vmem:[%s1855_s5 + $0xf8] sm:$0xff] %vm961_vm0, %v958_v46 }

</bundles_post_ra>
